<compile_context>
chip_gen: v5e
topology: v5e:2x2
jax: 0.10.0
libtpu: 0.0.40
codegen_flags: <defaults>
</compile_context>

<pallas_src>
import math
import functools

import jax
import jax.numpy as jnp
from jax import lax
from jax.experimental import pallas as pl
from jax.experimental.pallas import tpu as pltpu


_VMEM_LIMIT = 32 * 1024 * 1024   # explicit scoped-VMEM budget; safe on v5e/v6e/v7x


# ----------------------------------------------------------------------------
# Tiled linear projection:  y = x @ W^T + b   (W kept in PyTorch (d_out, d_in) layout)
# ----------------------------------------------------------------------------
def _pick_linear_tiles(n, d_out, d_in, itemsize=4):
    # K tile: never create a partial reduction block (padding along the contraction
    # dim is unspecified and would corrupt the accumulator).
    if d_in <= 4096:
        tk = d_in
    else:
        tk = next((t for t in (2048, 1024, 512, 256, 128) if d_in % t == 0), d_in)
    # Row tile: keep the double-buffered (tm, tk) activation slab around <= 4 MiB.
    budget_rows = max(8, (4 * 1024 * 1024) // max(1, tk * itemsize))
    tm = min(n, 512, budget_rows)
    if tm < n:
        tm = max(8, (tm // 8) * 8)
    # Col tile: keep the double-buffered (tn, tk) weight slab around <= 8 MiB.
    budget_cols = max(128, (8 * 1024 * 1024) // max(1, tk * itemsize))
    tn = min(d_out, 512, budget_cols)
    if tn < d_out:
        tn = max(128, (tn // 128) * 128)
    return tm, tn, tk


def _linear_kernel(x_ref, w_ref, b_ref, o_ref, acc_ref, *, mxu_dtype):
    k = pl.program_id(2)

    @pl.when(k == 0)
    def _():
        acc_ref[...] = jnp.zeros_like(acc_ref)

    x = x_ref[...]                      # (tm, tk)
    w = w_ref[...]                      # (tn, tk) -- PyTorch layout, no HBM transpose
    dot_dtype = mxu_dtype if mxu_dtype is not None else x.dtype
    acc_ref[...] += lax.dot_general(
        x.astype(dot_dtype), w.astype(dot_dtype),
        (((1,), (1,)), ((), ())),       # contract last dims of both => x @ W^T
        preferred_element_type=jnp.float32)

    @pl.when(k == pl.num_programs(2) - 1)
    def _():
        o_ref[...] = (acc_ref[...] + b_ref[...].astype(jnp.float32)).astype(o_ref.dtype)


def pallas_linear(x2d, weight, bias, *, out_dtype=None, mxu_dtype=None):
    """x2d: (N, d_in); weight: (d_out, d_in) [PyTorch]; bias: (d_out,)."""
    n, d_in = x2d.shape
    d_out = weight.shape[0]
    out_dtype = out_dtype if out_dtype is not None else x2d.dtype
    b2 = bias.reshape(1, d_out)

    tm, tn, tk = _pick_linear_tiles(n, d_out, d_in)
    grid = (pl.cdiv(n, tm), pl.cdiv(d_out, tn), pl.cdiv(d_in, tk))

    cost = pl.CostEstimate(
        flops=2 * n * d_in * d_out,
        transcendentals=0,
        bytes_accessed=(n * d_in + d_out * d_in) * x2d.dtype.itemsize
                       + d_out * bias.dtype.itemsize
                       + n * d_out * jnp.dtype(out_dtype).itemsize)

    return pl.pallas_call(
        functools.partial(_linear_kernel, mxu_dtype=mxu_dtype),
        out_shape=jax.ShapeDtypeStruct((n, d_out), out_dtype),
        grid_spec=pltpu.PrefetchScalarGridSpec(
            num_scalar_prefetch=0,
            grid=grid,
            in_specs=[
                pl.BlockSpec((tm, tk), lambda i, j, k: (i, k)),
                pl.BlockSpec((tn, tk), lambda i, j, k: (j, k)),
                pl.BlockSpec((1, tn), lambda i, j, k: (0, j)),
            ],
            out_specs=pl.BlockSpec((tm, tn), lambda i, j, k: (i, j)),
            scratch_shapes=[pltpu.VMEM((tm, tn), jnp.float32)],
        ),
        compiler_params=pltpu.CompilerParams(
            dimension_semantics=("parallel", "parallel", "arbitrary"),
            vmem_limit_bytes=_VMEM_LIMIT),
        cost_estimate=cost,
    )(x2d, weight, b2)


# ----------------------------------------------------------------------------
# Fused multi-head attention on (B, seq, H*E) projections (no head transposes)
# ----------------------------------------------------------------------------
def _attention_kernel(q_ref, k_ref, v_ref, o_ref, *, n_heads, e_head, d_head,
                      scale, head_major, mxu_dtype, approx):
    q = q_ref[0]                        # (tq, H*E)
    k = k_ref[0]                        # (S,  H*E)
    v = v_ref[0]                        # (S,  H*D)
    dot_dtype = mxu_dtype if mxu_dtype is not None else q.dtype

    for h in range(n_heads):            # static loop: static head-column slices
        # fold 1/sqrt(E) into q (L*E elems) instead of the (L,S) score matrix
        qh = q[:, h * e_head:(h + 1) * e_head].astype(jnp.float32) * scale
        kh = k[:, h * e_head:(h + 1) * e_head]
        vh = v[:, h * d_head:(h + 1) * d_head]

        # QK^T with no materialized transpose: contract last dims of both operands
        scores = lax.dot_general(
            qh.astype(dot_dtype), kh.astype(dot_dtype),
            (((1,), (1,)), ((), ())),
            preferred_element_type=jnp.float32)              # (tq, S) f32

        # softmax kept in f32 (v5e has no bf16 VPU/EUP)
        m = jnp.max(scores, axis=-1, keepdims=True)
        p = jnp.exp(scores - m)
        denom = jnp.sum(p, axis=-1, keepdims=True)
        p = p * pl.reciprocal(denom, approx=approx)

        out_h = lax.dot_general(
            p.astype(dot_dtype), vh.astype(dot_dtype),
            (((1,), (0,)), ((), ())),
            preferred_element_type=jnp.float32)              # (tq, D) f32

        if head_major:
            # mix=True quirk layout: (B,H,L,D) contiguous, later viewed flat as (B,L,H*D)
            o_ref[0, h, :, :] = out_h.astype(o_ref.dtype)
        else:
            # standard head concat into the (1, tq, H*D) output block
            o_ref[0, :, h * d_head:(h + 1) * d_head] = out_h.astype(o_ref.dtype)


def pallas_attention(q3, k3, v3, n_heads, *, mix, mxu_dtype=None,
                     approx_recip=False, out_dtype=None):
    """q3:(B,L,H*E), k3:(B,S,H*E), v3:(B,S,H*D) -> (B, L, H*D) (layout per `mix`)."""
    B, L, HE = q3.shape
    _, S, HD = v3.shape
    H = n_heads
    E = HE // H
    D = HD // H
    scale = 1.0 / math.sqrt(E)
    out_dtype = out_dtype if out_dtype is not None else q3.dtype

    tq = L if L <= 128 else 128
    grid = (B, pl.cdiv(L, tq))

    kernel = functools.partial(
        _attention_kernel, n_heads=H, e_head=E, d_head=D, scale=scale,
        head_major=mix, mxu_dtype=mxu_dtype, approx=approx_recip)

    in_specs = [
        pl.BlockSpec((1, tq, HE), lambda b, qi: (b, qi, 0)),
        pl.BlockSpec((1, S, HE), lambda b, qi: (b, 0, 0)),   # reused across q-tiles
        pl.BlockSpec((1, S, HD), lambda b, qi: (b, 0, 0)),
    ]
    if mix:
        out_shape = jax.ShapeDtypeStruct((B, H, L, D), out_dtype)
        out_spec = pl.BlockSpec((1, H, tq, D), lambda b, qi: (b, 0, qi, 0))
    else:
        out_shape = jax.ShapeDtypeStruct((B, L, HD), out_dtype)
        out_spec = pl.BlockSpec((1, tq, HD), lambda b, qi: (b, qi, 0))

    cost = pl.CostEstimate(
        flops=2 * B * H * L * S * (E + D),
        transcendentals=B * H * L * S,
        bytes_accessed=(q3.size + k3.size + v3.size) * q3.dtype.itemsize
                       + B * L * HD * jnp.dtype(out_dtype).itemsize)

    out = pl.pallas_call(
        kernel,
        out_shape=out_shape,
        grid_spec=pltpu.PrefetchScalarGridSpec(
            num_scalar_prefetch=0,
            grid=grid,
            in_specs=in_specs,
            out_specs=out_spec,
        ),
        compiler_params=pltpu.CompilerParams(
            dimension_semantics=("parallel", "parallel"),
            vmem_limit_bytes=_VMEM_LIMIT),
        cost_estimate=cost,
    )(q3, k3, v3)

    if mix:
        # PyTorch mix=True: V.transpose(2,1).contiguous().view(B,L,-1) — i.e. the
        # (B,H,L,D) row-major buffer reinterpreted as (B, L, H*D).  NOT a standard
        # head concat (heads/query positions interleave); free reshape, no movement.
        out = out.reshape(B, L, H * D)
    return out


# ----------------------------------------------------------------------------
# AttentionLayer forward
# ----------------------------------------------------------------------------
def attention_layer_forward(params, queries, keys, values, n_heads, *,
                            mix=True, mxu_dtype=None, approx_recip=False):
    B, L, d_model = queries.shape
    _, S, _ = keys.shape
    H = n_heads

    # intermediate activations stored in the MXU dtype (bf16 on v6e/v7x fast path)
    act_dtype = mxu_dtype if mxu_dtype is not None else queries.dtype

    q = pallas_linear(queries.reshape(B * L, d_model), params["wq"], params["bq"],
                      out_dtype=act_dtype, mxu_dtype=mxu_dtype).reshape(B, L, -1)
    k = pallas_linear(keys.reshape(B * S, d_model), params["wk"], params["bk"],
                      out_dtype=act_dtype, mxu_dtype=mxu_dtype).reshape(B, S, -1)
    v = pallas_linear(values.reshape(B * S, d_model), params["wv"], params["bv"],
                      out_dtype=act_dtype, mxu_dtype=mxu_dtype).reshape(B, S, -1)

    # fused MHA straight on the (B, seq, H*E) projections — no jnp.transpose passes
    out_flat = pallas_attention(q, k, v, H, mix=mix, mxu_dtype=mxu_dtype,
                                approx_recip=approx_recip, out_dtype=act_dtype)

    out = pallas_linear(out_flat.reshape(B * L, -1), params["wo"], params["bo"],
                        out_dtype=queries.dtype, mxu_dtype=mxu_dtype).reshape(B, L, d_model)
    return out


# ----------------------------------------------------------------------------
# Parameter init (PyTorch Linear shapes: weight (out, in)) and pure-JAX reference
# ----------------------------------------------------------------------------
def init_params(key, d_model, n_heads):
    d_keys = d_model // n_heads
    d_values = d_model // n_heads
    ks = jax.random.split(key, 8)

    def lin(kw, kb, d_out, d_in):
        bound = 1.0 / math.sqrt(d_in)
        w = jax.random.uniform(kw, (d_out, d_in), jnp.float32, -bound, bound)
        b = jax.random.uniform(kb, (d_out,), jnp.float32, -bound, bound)
        return w, b

    wq, bq = lin(ks[0], ks[1], d_keys * n_heads, d_model)
    wk, bk = lin(ks[2], ks[3], d_keys * n_heads, d_model)
    wv, bv = lin(ks[4], ks[5], d_values * n_heads, d_model)
    wo, bo = lin(ks[6], ks[7], d_model, d_values * n_heads)
    return dict(wq=wq, bq=bq, wk=wk, bk=bk, wv=wv, bv=bv, wo=wo, bo=bo)


def reference_forward(params, queries, keys, values, n_heads, mix=True):
    B, L, d_model = queries.shape
    _, S, _ = keys.shape
    H = n_heads
    q = (queries @ params["wq"].T + params["bq"]).reshape(B, L, H, -1)
    k = (keys @ params["wk"].T + params["bk"]).reshape(B, S, H, -1)
    v = (values @ params["wv"].T + params["bv"]).reshape(B, S, H, -1)
    E = q.shape[-1]
    scale = 1.0 / math.sqrt(E)
    scores = jnp.einsum("blhe,bshe->bhls", q, k)
    a = jax.nn.softmax(scale * scores, axis=-1)
    out = jnp.einsum("bhls,bshd->blhd", a, v)        # (B,L,H,D)
    if mix:
        out = jnp.transpose(out, (0, 2, 1, 3))        # (B,H,L,D)
    out = out.reshape(B, L, -1)
    return out @ params["wo"].T + params["bo"]


if __name__ == "__main__":
    B, L, S = 2, 8, 8
    d_model, n_heads = 32, 4

    key = jax.random.PRNGKey(0)
    kp, kq, kk, kv = jax.random.split(key, 4)
    params = init_params(kp, d_model, n_heads)

    queries = jax.random.normal(kq, (B, L, d_model), jnp.float32)
    keys = jax.random.normal(kk, (B, S, d_model), jnp.float32)
    values = jax.random.normal(kv, (B, S, d_model), jnp.float32)

    ref_mix = reference_forward(params, queries, keys, values, n_heads, mix=True)
    ref_nomix = reference_forward(params, queries, keys, values, n_heads, mix=False)

    # f32 path (tight parity with the PyTorch module, mix=True default)
    out = attention_layer_forward(params, queries, keys, values, n_heads, mix=True)
    out = jax.block_until_ready(out)
    assert out.shape == (B, L, d_model)
    assert jnp.allclose(out, ref_mix, atol=1e-4, rtol=1e-4), "f32 / mix=True mismatch"

    # f32 path, mix=False (lane-dense attention output)
    out_nm = attention_layer_forward(params, queries, keys, values, n_heads, mix=False)
    out_nm = jax.block_until_ready(out_nm)
    assert jnp.allclose(out_nm, ref_nomix, atol=1e-4, rtol=1e-4), "f32 / mix=False mismatch"

    # fast path for v6e/v7x: bf16 MXU operands + EUP approx reciprocal
    out_fast = attention_layer_forward(params, queries, keys, values, n_heads,
                                       mix=True, mxu_dtype=jnp.bfloat16,
                                       approx_recip=True)
    out_fast = jax.block_until_ready(out_fast)
    assert jnp.allclose(out_fast, ref_mix, atol=5e-2, rtol=5e-2), "bf16 fast-path mismatch"

    print("KERNEL_OK")
</pallas_src>

<mosaic_0001>
module attributes {stable_mosaic.version = 11 : i64} {
  func.func @_linear_kernel(%arg0: i32, %arg1: i32, %arg2: i32, %arg3: memref<16x32xf32, #tpu.memory_space<vmem>>, %arg4: memref<32x32xf32, #tpu.memory_space<vmem>>, %arg5: memref<1x32xf32, #tpu.memory_space<vmem>>, %arg6: memref<16x32xf32, #tpu.memory_space<vmem>>, %arg7: memref<16x32xf32, #tpu.memory_space<vmem>>) attributes {dimension_semantics = [#tpu.dimension_semantics<parallel>, #tpu.dimension_semantics<parallel>, #tpu.dimension_semantics<arbitrary>], iteration_bounds = array<i64: 1, 1, 1>, scalar_prefetch = 0 : i64, scratch_operands = 1 : i64, tpu.core_type = #tpu.core_type<tc>, window_params = [{transform_indices = @transform_0, window_bounds = array<i64: 16, 32>}, {transform_indices = @transform_1, window_bounds = array<i64: 32, 32>}, {transform_indices = @transform_2, window_bounds = array<i64: 1, 32>}, {transform_indices = @transform_3, window_bounds = array<i64: 16, 32>}]} {
    %c0_i32 = arith.constant 0 : i32
    %0 = arith.cmpi eq, %arg2, %c0_i32 : i32
    %1 = arith.extui %0 : i1 to i32
    %c0_i32_0 = arith.constant 0 : i32
    %2 = arith.cmpi ne, %1, %c0_i32_0 : i32
    scf.if %2 {
      %cst_10 = arith.constant 0.000000e+00 : f32
      %12 = vector.broadcast %cst_10 : f32 to vector<16x32xf32>
      %c0_11 = arith.constant 0 : index
      %c0_12 = arith.constant 0 : index
      %13 = vector.load %arg7[%c0_11, %c0_12] : memref<16x32xf32, #tpu.memory_space<vmem>>, vector<16x32xf32>
      tpu.vector_store %arg7[%c0_11, %c0_12], %12 {strides = array<i32>} : memref<16x32xf32, #tpu.memory_space<vmem>>, vector<16x32xf32>,
    } else {
    }
    %c0 = arith.constant 0 : index
    %c0_1 = arith.constant 0 : index
    %3 = vector.load %arg3[%c0, %c0_1] : memref<16x32xf32, #tpu.memory_space<vmem>>, vector<16x32xf32>
    %c0_2 = arith.constant 0 : index
    %c0_3 = arith.constant 0 : index
    %4 = vector.load %arg4[%c0_2, %c0_3] : memref<32x32xf32, #tpu.memory_space<vmem>>, vector<32x32xf32>
    %c0_4 = arith.constant 0 : index
    %c0_5 = arith.constant 0 : index
    %5 = vector.load %arg7[%c0_4, %c0_5] : memref<16x32xf32, #tpu.memory_space<vmem>>, vector<16x32xf32>
    %cst = arith.constant dense<0.000000e+00> : vector<16x32xf32>
    %6 = tpu.matmul %3, %4, %cst {dimension_numbers = #tpu.dot_dimension_numbers<[1], [1], [0], [0], [0, 0, 1, 0], [], []>} : vector<16x32xf32>, vector<32x32xf32>, vector<16x32xf32> -> vector<16x32xf32>
    %7 = arith.addf %5, %6 : vector<16x32xf32>
    %c0_6 = arith.constant 0 : index
    %c0_7 = arith.constant 0 : index
    %8 = vector.load %arg7[%c0_6, %c0_7] : memref<16x32xf32, #tpu.memory_space<vmem>>, vector<16x32xf32>
    tpu.vector_store %arg7[%c0_6, %c0_7], %7 {strides = array<i32>} : memref<16x32xf32, #tpu.memory_space<vmem>>, vector<16x32xf32>,
    %c0_i32_8 = arith.constant 0 : i32
    %9 = arith.cmpi eq, %arg2, %c0_i32_8 : i32
    %10 = arith.extui %9 : i1 to i32
    %c0_i32_9 = arith.constant 0 : i32
    %11 = arith.cmpi ne, %10, %c0_i32_9 : i32
    scf.if %11 {
      %c0_10 = arith.constant 0 : index
      %c0_11 = arith.constant 0 : index
      %12 = vector.load %arg7[%c0_10, %c0_11] : memref<16x32xf32, #tpu.memory_space<vmem>>, vector<16x32xf32>
      %c0_12 = arith.constant 0 : index
      %c0_13 = arith.constant 0 : index
      %13 = vector.load %arg5[%c0_12, %c0_13] : memref<1x32xf32, #tpu.memory_space<vmem>>, vector<1x32xf32>
      %14 = vector.broadcast %13 : vector<1x32xf32> to vector<16x32xf32>
      %15 = arith.addf %12, %14 : vector<16x32xf32>
      %c0_14 = arith.constant 0 : index
      %c0_15 = arith.constant 0 : index
      %16 = vector.load %arg6[%c0_14, %c0_15] : memref<16x32xf32, #tpu.memory_space<vmem>>, vector<16x32xf32>
      tpu.vector_store %arg6[%c0_14, %c0_15], %15 {strides = array<i32>} : memref<16x32xf32, #tpu.memory_space<vmem>>, vector<16x32xf32>,
    } else {
    }
    return
  }
  func.func @transform_0(%arg0: i32, %arg1: i32, %arg2: i32) -> (i32, i32) {
    %c0_i32 = arith.constant 0 : i32
    return %arg0, %arg2 : i32, i32
  }
  func.func @transform_1(%arg0: i32, %arg1: i32, %arg2: i32) -> (i32, i32) {
    %c0_i32 = arith.constant 0 : i32
    return %arg1, %arg2 : i32, i32
  }
  func.func @transform_2(%arg0: i32, %arg1: i32, %arg2: i32) -> (i32, i32) {
    %c0_i32 = arith.constant 0 : i32
    %c0_i32_0 = arith.constant 0 : i32
    return %c0_i32, %arg1 : i32, i32
  }
  func.func @transform_3(%arg0: i32, %arg1: i32, %arg2: i32) -> (i32, i32) {
    %c0_i32 = arith.constant 0 : i32
    return %arg0, %arg1 : i32, i32
  }
}

</mosaic_0001>

<bundles_post_ra>
// kernel: tpu_custom_call.1
= control target key start
LH: loop header
LB: loop body
LE: loop exit
PB: predicated region body
PF: predicated region fallthrough
CT: control target
= control target key end

     0   :  { %8 = vsyncpa [#allocation4], 0  ;;  %s299_s0 = inlined_call_operand.hbm [shape: f32[16,32], index: 0, kind: input, shape index: {}]   ;;  %s300_s1 = inlined_call_operand.hbm [shape: f32[32,32], index: 1, kind: input, shape index: {}]   ;;  %s301_s2 = inlined_call_operand.vmem [shape: f32[1,32], index: 2, kind: input, shape index: {}]   ;;  %s302_s3 = inlined_call_operand.hbm [shape: f32[16,32], index: 3, kind: output, shape index: {}]  }
   0x1   :  { %9 = vsyncpa [#allocation7], 0 }
   0x2   :  { %10 = vsyncpa [#allocation5], 0  ;;  %s15_s14 = sshll.u32 %s299_s0, 4  ;;  %s236_s15 = smov [#allocation3]   ;;  %s16_s14 = int_to_ptr.hbm [resolvable:$true] %s15_s14 }
   0x3   :  { %s17_s16 = sshll.u32 %s236_s15, 4  ;;  %s28_s19 = sshll.u32 %s300_s1, 4  ;;  %s18_s16 = int_to_ptr.vmem [resolvable:$true] %s17_s16  ;;  %s29_s19 = int_to_ptr.hbm [resolvable:$true] %s28_s19 }
   0x4   :  { %s237_s20 = smov 128   ;;  %s238_s21 = smov 8  }
   0x5   :  { %23 = dma.hbm_to_vmem [thread:$0]  %s16_s14, 256, %s18_s16, [#allocation4], %s237_s20, %s237_s20, %s238_s21  }
   0x6   :  { %s239_s22 = smov [#allocation6]  }
   0x7   :  { %s30_s23 = sshll.u32 %s239_s22, 4  ;;  %s31_s23 = int_to_ptr.vmem [resolvable:$true] %s30_s23 }
   0x8   :  { %36 = dma.hbm_to_vmem [thread:$0]  %s29_s19, 512, %s31_s23, [#allocation7], %s237_s20, %s237_s20, %s238_s21  }
   0x9   :  { %230 = dma.done.wait [#allocation4], 256  }
   0xa   :  { %231 = vsyncadd [#allocation4], 4294967040 }
   0xb   :  { %232 = dma.done.wait [#allocation7], 512  }
   0xc   :  { %233 = vsyncadd [#allocation7], 4294966784  ;;  %vm51_vm0 = vcmask 261120   ;;  %v240_v0 = vmov 0.0   ;;  %v59_v1 = vld [vmem:[#allocation6 + $0x18] sm:$0xff]  ;;  %v58_v2 = vld [vmem:[#allocation6 + $0x10] sm:$0xff] }
   0xd   :  { %52 = vst.msk [vmem:[#allocation2] sm:$0xff] %vm51_vm0, %v240_v0  ;;  %141 = vmatpush.xpose.msk.msra.mxu0 %vm51_vm0, %v59_v1  ;;  %147 = vmatpush.xpose.msk.msra.mxu1 %vm51_vm0, %v59_v1  ;;  %v57_v3 = vld [vmem:[#allocation6 + $0x8] sm:$0xff]  ;;  %v56_v4 = vld [vmem:[#allocation6] sm:$0xff]  ;;  %v54_v5 = vld [vmem:[#allocation3] sm:$0xff]  ;;  %s241_s24 = smov [#allocation8]   ;;  %s127_s28 = sshll.u32 %s302_s3, 4  ;;  %s128_s28 = int_to_ptr.hbm [resolvable:$true] %s127_s28 }
   0xe   :  { %53 = vst.msk [vmem:[#allocation2 + $0x8] sm:$0xff] %vm51_vm0, %v240_v0  ;;  %v55_v6 = vld [vmem:[#allocation3 + $0x8] sm:$0xff]  ;;  %v157_v13 = vld [vmem:[%s301_s2] ss:$0 sm:$0xff]  ;;  %s125_s25 = sshll.u32 %s241_s24, 4  ;;  %s126_s25 = int_to_ptr.vmem [resolvable:$true] %s125_s25 }
  0x11   :  { %142 = vmatpush.xpose.msk.msra.mxu0 %vm51_vm0, %v58_v2  ;;  %148 = vmatpush.xpose.msk.msra.mxu1 %vm51_vm0, %v58_v2 }
  0x14   :  { %v60_v7 = vld [vmem:[#allocation2] sm:$0xff] }
  0x15   :  { %143 = vmatpush.xpose.msk.msra.mxu0 %vm51_vm0, %v57_v3  ;;  %149 = vmatpush.xpose.msk.msra.mxu1 %vm51_vm0, %v57_v3  ;;  %v61_v8 = vld [vmem:[#allocation2 + $0x8] sm:$0xff] }
  0x19   :  { %144 = vmatpush.xpose.msk.msra.mxu0 %vm51_vm0, %v56_v4  ;;  %150 = vmatpush.xpose.msk.msra.mxu1 %vm51_vm0, %v56_v4 }
  0x1c   :  { %145 = vmatmul.msk.f32.vlgmr.msra.gmra.mxu0 %vm51_vm0, %v54_v5  ;;  %146 = vmatmul.msk.f32.vlgmr.msra.gmra.mxu1 %vm51_vm0, %v55_v6 }
  0x99   :  { %v98_v9 = vpop.f32.mrf.mxu0  ;;  %v101_v10 = vpop.f32.mrf.mxu1 }
  0x9a   :  { %v104_v11 = vadd.f32 %v98_v9, %v60_v7  ;;  %v105_v12 = vadd.f32 %v101_v10, %v61_v8 }
  0x9c   :  { %106 = vst.msk [vmem:[#allocation2] sm:$0xff] %vm51_vm0, %v104_v11 }
  0x9d   :  { %107 = vst.msk [vmem:[#allocation2 + $0x8] sm:$0xff] %vm51_vm0, %v105_v12 }
  0xa3   :  { %v111_v14 = vld [vmem:[#allocation2] sm:$0xff] }
  0xa4   :  { %v112_v15 = vld [vmem:[#allocation2 + $0x8] sm:$0xff]  ;;  %v117_v16 = vadd.f32 %v157_v13, %v111_v14 }
  0xa5   :  { %v118_v17 = vadd.f32 %v157_v13, %v112_v15 }
  0xa6   :  { %119 = vst.msk [vmem:[#allocation8] sm:$0xff] %vm51_vm0, %v117_v16 }
  0xa7   :  { %120 = vst.msk [vmem:[#allocation8 + $0x8] sm:$0xff] %vm51_vm0, %v118_v17 }
  0xa8   :  { %133 = dma.vmem_to_hbm [thread:$0]  %s126_s25, 256, %s128_s28, [#allocation5], %s237_s20, %s237_s20, %s238_s21  }
  0xa9   :  { %234 = dma.done.wait [#allocation5], 256  }
  0xaa   :  { %235 = vsyncadd [#allocation5], 4294967040 }
  0xab   :  { %138 = vsyncpa [#allocation4], 1 }
  0xac   :  { %139 = vsyncpa [#allocation7], 1 }
  0xad   :  { %140 = vsyncpa [#allocation5], 1 }

</bundles_post_ra>
